<compile_context>
chip_gen: v6e
topology: v6e:2x2x1
jax: 0.10.0
libtpu: 0.0.40
codegen_flags: <defaults>
</compile_context>

<pallas_src>
import functools

import jax
import jax.numpy as jnp
from jax import lax
from jax.experimental import pallas as pl
from jax.experimental.pallas import tpu as pltpu

EPS = 1e-12  # torch F.normalize default eps


# ---------------------------------------------------------------------------
# Kernels
# ---------------------------------------------------------------------------
def _l2norm_kernel(x_ref, o_ref):
    """Block = (tile_b, C, HW) or (1, C, tile_hw); normalize over axis -2 (C)."""
    x = x_ref[...]
    xf = x.astype(jnp.float32)
    sumsq = jnp.sum(xf * xf, axis=-2, keepdims=True)              # f32 sublane reduce
    inv = lax.rsqrt(jnp.maximum(sumsq, jnp.float32(EPS * EPS)))   # EUP rsqrt
    o_ref[...] = (x * inv).astype(o_ref.dtype)                    # VPU multiply


def _sumsq_inv_kernel(x_ref, inv_ref, acc_ref, *, c_total, tile_c, need_mask):
    """Large-C fallback pass 1: accumulate sum(x^2) over C tiles, emit 1/||x||."""
    c_step = pl.program_id(2)

    @pl.when(c_step == 0)
    def _():
        acc_ref[...] = jnp.zeros_like(acc_ref)

    xf = x_ref[...].astype(jnp.float32)
    if need_mask:  # zero out-of-range channels on the edge C tile
        c_idx = c_step * tile_c + lax.broadcasted_iota(jnp.int32, xf.shape, 1)
        xf = jnp.where(c_idx < c_total, xf, 0.0)
    acc_ref[...] += jnp.sum(xf * xf, axis=1, keepdims=True)

    @pl.when(c_step == pl.num_programs(2) - 1)
    def _():
        inv_ref[...] = lax.rsqrt(jnp.maximum(acc_ref[...], jnp.float32(EPS * EPS)))


def _scale_kernel(x_ref, inv_ref, o_ref):
    """Large-C fallback pass 2: o = x * (1/||x||)."""
    o_ref[...] = (x_ref[...] * inv_ref[...]).astype(o_ref.dtype)


# ---------------------------------------------------------------------------
# Sizing helpers
# ---------------------------------------------------------------------------
def _tpu_budgets():
    """(target_block_bytes, vmem_limit_bytes) per TPU generation."""
    try:
        vmem_cap = pltpu.get_tpu_info().vmem_capacity_bytes
    except Exception:
        vmem_cap = 128 * 1024 * 1024
    if vmem_cap <= 64 * 1024 * 1024:
        # v7x-class: ~3.2 TB/s HBM makes 2 MiB steps overhead-heavy; 6 MiB blocks
        # under a 48 MiB scoped limit stay well inside 64 MiB physical VMEM.
        return 6 * 1024 * 1024, 48 * 1024 * 1024
    # v5e / v6e: 128 MiB physical VMEM; 4 MiB blocks are already near roofline.
    return 4 * 1024 * 1024, 64 * 1024 * 1024


def _vmem_need(n_elems, itemsize):
    # in + out double-buffered blocks plus ~2 f32-sized temporaries (upcast path).
    return 4 * n_elems * itemsize + 2 * n_elems * 4


def _fits(n_elems, itemsize, vmem_limit):
    return _vmem_need(n_elems, itemsize) <= int(0.9 * vmem_limit)


def _pick_tile_hw(C, HW, itemsize, target_block_bytes, vmem_limit):
    """Lane-aligned HW tile ~target bytes; >=512-lane floor for DMA-efficient rows
    on large C; shrunk (never below 128) if the VMEM budget is tight."""
    if HW <= 128:
        return HW                                    # full extent is always valid
    tile = (target_block_bytes // max(1, C * itemsize)) // 128 * 128
    tile = max(tile, 512 if HW >= 512 else 128)
    if tile >= HW:
        tile = HW                                    # full extent
    while tile > 128 and not _fits(C * tile, itemsize, vmem_limit):
        tile = max(128, (tile // 2) // 128 * 128)
    return int(tile)


# ---------------------------------------------------------------------------
# pallas_call wrappers
# ---------------------------------------------------------------------------
def _l2norm_bchw(x3):
    """x3: (B, C, HW) -> L2-normalized over C for every (b, hw) column."""
    B, C, HW = x3.shape
    itemsize = x3.dtype.itemsize
    target, vmem_limit = _tpu_budgets()
    per_batch = C * HW * itemsize
    cost = pl.CostEstimate(flops=3 * B * C * HW,
                           transcendentals=B * HW,
                           bytes_accessed=2 * B * C * HW * itemsize)

    # ---- Path 1: whole (C, HW) per block, tile over batch --------------------
    if B > 1 and per_batch <= target and _fits(C * HW, itemsize, vmem_limit):
        tile_b = max(1, min(B, target // max(1, per_batch)))
        tile_b = min(tile_b, pl.cdiv(B, 2))          # >=2 parallel tiles (v7x 2 TCs)
        while tile_b > 1 and not _fits(tile_b * C * HW, itemsize, vmem_limit):
            tile_b -= 1
        return pl.pallas_call(
            _l2norm_kernel,
            out_shape=jax.ShapeDtypeStruct((B, C, HW), x3.dtype),
            grid_spec=pltpu.PrefetchScalarGridSpec(
                num_scalar_prefetch=0,
                grid=(pl.cdiv(B, tile_b),),
                in_specs=[pl.BlockSpec((tile_b, C, HW), lambda i: (i, 0, 0))],
                out_specs=pl.BlockSpec((tile_b, C, HW), lambda i: (i, 0, 0)),
            ),
            compiler_params=pltpu.CompilerParams(
                dimension_semantics=("parallel",),
                vmem_limit_bytes=vmem_limit),
            cost_estimate=cost,
        )(x3)

    # ---- Path 2: per-batch blocks, tile over HW ------------------------------
    tile_hw = _pick_tile_hw(C, HW, itemsize, target, vmem_limit)
    if B == 1 and tile_hw >= HW and HW >= 256:
        # split HW so both v7x TensorCores get a tile
        tile_hw = min(tile_hw, ((HW + 1) // 2 + 127) // 128 * 128)
    if _fits(C * tile_hw, itemsize, vmem_limit):
        return pl.pallas_call(
            _l2norm_kernel,
            out_shape=jax.ShapeDtypeStruct((B, C, HW), x3.dtype),
            grid_spec=pltpu.PrefetchScalarGridSpec(
                num_scalar_prefetch=0,
                grid=(B, pl.cdiv(HW, tile_hw)),
                in_specs=[pl.BlockSpec((1, C, tile_hw), lambda b, j: (b, 0, j))],
                out_specs=pl.BlockSpec((1, C, tile_hw), lambda b, j: (b, 0, j)),
            ),
            compiler_params=pltpu.CompilerParams(
                dimension_semantics=("parallel", "parallel"),
                vmem_limit_bytes=vmem_limit),
            cost_estimate=cost,
        )(x3)

    # ---- Path 3: very large C — two passes with a C reduction axis -----------
    return _l2norm_two_pass(x3, target, vmem_limit)


def _l2norm_two_pass(x3, target, vmem_limit):
    """Fallback when full C cannot stay resident even at a 128-lane tile."""
    B, C, HW = x3.shape
    itemsize = x3.dtype.itemsize
    tile_hw = HW if HW <= 512 else 512
    tile_c = max(8, min(C, (target // max(1, tile_hw * itemsize)) // 8 * 8))
    while tile_c > 8 and not _fits(tile_c * tile_hw, itemsize, vmem_limit):
        tile_c = max(8, (tile_c // 2) // 8 * 8)

    grid = (B, pl.cdiv(HW, tile_hw), pl.cdiv(C, tile_c))
    x_spec = pl.BlockSpec((1, tile_c, tile_hw), lambda b, j, k: (b, k, j))
    inv_spec = pl.BlockSpec((1, 1, tile_hw), lambda b, j, k: (b, 0, j))

    inv = pl.pallas_call(
        functools.partial(_sumsq_inv_kernel, c_total=C, tile_c=tile_c,
                          need_mask=(C % tile_c != 0)),
        out_shape=jax.ShapeDtypeStruct((B, 1, HW), jnp.float32),
        grid_spec=pltpu.PrefetchScalarGridSpec(
            num_scalar_prefetch=0,
            grid=grid,
            in_specs=[x_spec],
            out_specs=inv_spec,
            scratch_shapes=[pltpu.VMEM((1, 1, tile_hw), jnp.float32)],
        ),
        compiler_params=pltpu.CompilerParams(
            dimension_semantics=("parallel", "parallel", "arbitrary"),
            vmem_limit_bytes=vmem_limit),
        cost_estimate=pl.CostEstimate(flops=2 * B * C * HW, transcendentals=B * HW,
                                      bytes_accessed=B * C * HW * itemsize),
    )(x3)

    return pl.pallas_call(
        _scale_kernel,
        out_shape=jax.ShapeDtypeStruct((B, C, HW), x3.dtype),
        grid_spec=pltpu.PrefetchScalarGridSpec(
            num_scalar_prefetch=0,
            grid=grid,
            in_specs=[x_spec, inv_spec],
            out_specs=x_spec,
        ),
        compiler_params=pltpu.CompilerParams(
            dimension_semantics=("parallel", "parallel", "parallel"),
            vmem_limit_bytes=vmem_limit),
        cost_estimate=pl.CostEstimate(flops=B * C * HW, transcendentals=0,
                                      bytes_accessed=2 * B * C * HW * itemsize),
    )(x3, inv)


# ---------------------------------------------------------------------------
# Public API
# ---------------------------------------------------------------------------
def l2norm(x, dim=1):
    """Equivalent of torch L2Norm forward: F.normalize(x, p=2.0, dim=dim).

    x is NCHW (B, C, H, W); default dim=1 normalizes over channels."""
    assert dim == 1, "this implementation mirrors the module default dim=1"
    B, C, H, W = x.shape
    x3 = x.reshape(B, C, H * W)            # free, contiguous NCHW -> (B, C, HW)
    return _l2norm_bchw(x3).reshape(B, C, H, W)


def _reference(x, dim=1, eps=EPS):
    norm = jnp.sqrt(jnp.sum(x.astype(jnp.float32) ** 2, axis=dim, keepdims=True))
    return (x / jnp.maximum(norm, eps)).astype(x.dtype)


if __name__ == "__main__":
    key = jax.random.PRNGKey(0)
    x = jax.random.normal(key, (2, 4, 16, 16), dtype=jnp.float32)  # NCHW

    y = l2norm(x, dim=1)
    y = jax.block_until_ready(y)

    y_ref = _reference(x, dim=1)
    assert y.shape == x.shape and y.dtype == x.dtype
    assert jnp.allclose(y, y_ref, atol=1e-5, rtol=1e-5)

    print("KERNEL_OK")
</pallas_src>

<mosaic_0001>
module attributes {stable_mosaic.version = 11 : i64} {
  func.func @_l2norm_kernel(%arg0: i32, %arg1: memref<1x4x256xf32, #tpu.memory_space<vmem>>, %arg2: memref<1x4x256xf32, #tpu.memory_space<vmem>>) attributes {dimension_semantics = [#tpu.dimension_semantics<parallel>], iteration_bounds = array<i64: 2>, scalar_prefetch = 0 : i64, scratch_operands = 0 : i64, tpu.core_type = #tpu.core_type<tc>, window_params = [{transform_indices = @transform_0, window_bounds = array<i64: 1, 4, 256>}, {transform_indices = @transform_1, window_bounds = array<i64: 1, 4, 256>}]} {
    %c0 = arith.constant 0 : index
    %c0_0 = arith.constant 0 : index
    %c0_1 = arith.constant 0 : index
    %0 = vector.load %arg1[%c0, %c0_0, %c0_1] : memref<1x4x256xf32, #tpu.memory_space<vmem>>, vector<1x4x256xf32>
    %1 = arith.mulf %0, %0 : vector<1x4x256xf32>
    %cst = arith.constant dense<0.000000e+00> : vector<1x256xf32>
    %2 = vector.multi_reduction <add>, %1, %cst [1] : vector<1x4x256xf32> to vector<1x256xf32>
    %3 = vector.shape_cast %2 : vector<1x256xf32> to vector<1x1x256xf32>
    %cst_2 = arith.constant 1.000000e-24 : f32
    %4 = vector.broadcast %cst_2 : f32 to vector<1x1x256xf32>
    %5 = arith.maximumf %3, %4 : vector<1x1x256xf32>
    %6 = math.rsqrt %5 : vector<1x1x256xf32>
    %7 = vector.broadcast %6 : vector<1x1x256xf32> to vector<1x4x256xf32>
    %8 = arith.mulf %0, %7 : vector<1x4x256xf32>
    %c0_3 = arith.constant 0 : index
    %c0_4 = arith.constant 0 : index
    %c0_5 = arith.constant 0 : index
    %9 = vector.load %arg2[%c0_3, %c0_4, %c0_5] : memref<1x4x256xf32, #tpu.memory_space<vmem>>, vector<1x4x256xf32>
    tpu.vector_store %arg2[%c0_3, %c0_4, %c0_5], %8 {strides = array<i32>} : memref<1x4x256xf32, #tpu.memory_space<vmem>>, vector<1x4x256xf32>,
    return
  }
  func.func @transform_0(%arg0: i32) -> (i32, i32, i32) {
    %c0_i32 = arith.constant 0 : i32
    %c0_i32_0 = arith.constant 0 : i32
    %c0_i32_1 = arith.constant 0 : i32
    return %arg0, %c0_i32, %c0_i32_0 : i32, i32, i32
  }
  func.func @transform_1(%arg0: i32) -> (i32, i32, i32) {
    %c0_i32 = arith.constant 0 : i32
    %c0_i32_0 = arith.constant 0 : i32
    %c0_i32_1 = arith.constant 0 : i32
    return %arg0, %c0_i32, %c0_i32_0 : i32, i32, i32
  }
}

</mosaic_0001>

<bundles_post_ra>
// kernel: tpu_custom_call.1
= control target key start
LH: loop header
LB: loop body
LE: loop exit
PB: predicated region body
PF: predicated region fallthrough
CT: control target
= control target key end

     0   :  { %6 = vsyncpa [#allocation3], 0  ;;  %s561_s0 = inlined_call_operand.hbm [shape: f32[2,4,256], index: 0, kind: input, shape index: {}]   ;;  %s562_s1 = inlined_call_operand.hbm [shape: f32[2,4,256], index: 1, kind: output, shape index: {}]  }
   0x1   :  { %8 = vsyncpa [#allocation3 + $0x1], 0 }
   0x2   :  { %9 = vsyncpa [#allocation4], 0 }
   0x3   :  { %11 = vsyncpa [#allocation4 + $0x1], 0  ;;  %s420_s6 = smov 0   ;;  %s422_s7 = smov 0  }
   0x4   :  { %s424_s8 = smov 0   ;;  %s426_s9 = smov 0  }
   0x5 LB: > { %s441_s10 = sadd.s32 4294967295, %s406_s9   ;;  %s248_s11 = sadd.s32 4294967294, %s406_s9   ;;  %s406_s9 = sphi %s426_s9, %s579_s9   ;;  %s402_s8 = sphi %s424_s8, %s578_s8   ;;  %s398_s7 = sphi %s422_s7, %s577_s7   ;;  %s394_s6 = sphi %s420_s6, %s576_s6  }
   0x6   : > { %s445_s12 = sadd.s32 1, %s406_s9   ;;  %s24_s13 = sadd.s32 1, %s402_s8 }
   0x7   : > { %s21_s14 = ssub.s32 %s406_s9, %s445_s12  ;;  %p31_p0 = scmp.ne.s32.totalorder %s402_s8, %s398_s7 }
   0x8   : > { %p22_p1 = scmp.eq.s32.totalorder %s21_s14, 0  ;;  %p32_p2 = scmp.eq.s32.totalorder %s406_s9, 0 }
   0x9   : > { %p37_p3 = scmp.ne.s32.totalorder %s398_s7, %s394_s6  ;;  %p38_p4 = scmp.eq.s32.totalorder %s441_s10, 0 }
   0xa   : > { %s457_s15 = scalar_select %p22_p1, %s402_s8, %s24_s13  }
   0xb   : > { %p459_p5 = por %p32_p2, %p31_p0  ;;  %p463_p6 = por %p38_p4, %p37_p3 }
   0xc   : > { %p61_p7 = scmp.eq.s32.totalorder %s441_s10, 1  ;;  %p67_p8 = scmp.eq.s32.totalorder %s248_s11, 1 }
   0xd   : > { %s566_s17 = scalar_select %p463_p6, 1, 0 }
   0xe   : > { %p276_p10 = scmp.lt.s32.totalorder %s406_s9, 2  ;;  %p470_p11 = por %p61_p7, %p31_p0 }
   0xf   : > { %p474_p12 = por %p67_p8, %p37_p3  ;;  %s87_s20 = sand.u32 1, %s402_s8  }
  0x10   : > { %s567_s18 = scalar_select %p470_p11, 1, 0 }
  0x11   : > { %s568_s19 = scalar_select %p474_p12, 1, 0 }
  0x12   : > { %s262_s21 = sshll.u32 %s406_s9, 7  ;;  %s251_s22 = sshll.u32 %s87_s20, 3 }
  0x13   : > { %s483_s25 = scalar_lea.hbm %s561_s0, %s262_s21  ;;  %s91_s26 = scalar_lea.vmem [#allocation2], %s251_s22 }
  0x14   : > { %s99_s27 = sshll.u32 %s91_s26, 4  ;;  %p487_p13 = pnand %p276_p10, %p459_p5  ;;  %s491_s27 = int_to_ptr.vmem [resolvable:$true] %s99_s27 }
  0x15   : > { %s88_s29 = scalar_lea.sflag [#allocation3], %s87_s20  ;;  %s314_s30 = scalar_lea.hbm %s483_s25, 128 }
  0x16   : > { %p315_p2 = scmp.ne.s32.totalorder %s483_s25, %s314_s30  ;;  %p316_p3 = pneg %p487_p13 }
  0x17   : > { %s319_s4 = scalar_lea.hbm %s561_s0, 256  ;;  %p320_p5 = scmp.lt.s32.totalorder %s483_s25, %s561_s0 }
  0x18   : > { %p317_p4 = pnand %p316_p3, %p315_p2  ;;  %p321_p8 = scmp.lt.s32.totalorder %s319_s4, %s314_s30 }
  0x1a   : > { %p318_p7 = pneg %p317_p4  ;;  %p322_p10 = por %p321_p8, %p320_p5 }
  0x1c   : > { %p323_p9 = pnand %p322_p10, %p318_p7 }
  0x1e   : > { %326 = shalt.err (!%p323_p9)
}
  0x1f   : > { %s327_s13 = scalar_lea.vmem %s491_s27, 128  ;;  %s408_s14 = smov [#allocation2]  }
  0x20   : > { %p328_p0 = scmp.ne.s32.totalorder %s491_s27, %s327_s13  ;;  %s332_s16 = sshll.u32 %s408_s14, 4  ;;  %s333_s16 = int_to_ptr.vmem [resolvable:$false] %s332_s16 }
  0x21   : > { %s334_s20 = scalar_lea.vmem %s333_s16, 256  ;;  %p335_p4 = scmp.lt.s32.totalorder %s491_s27, %s333_s16 }
  0x22   : > { %p330_p1 = pnand %p328_p0, %p316_p3  ;;  %p336_p12 = scmp.lt.s32.totalorder %s334_s20, %s327_s13 }
  0x24   : > { %p331_p2 = pneg %p330_p1  ;;  %p337_p11 = por %p336_p12, %p335_p4 }
  0x26   : > { %p338_p6 = pnand %p337_p11, %p331_p2 }
  0x28   : > { %341 = shalt.err (!%p338_p6)
}
  0x29   : > { %271 = dma.hbm_to_vmem [thread:$0]  (!%p487_p13), %s483_s25, 128, %s491_s27, %s88_s29  }
  0x2a   : > { %p570_p9 = scmp.lt.s32.totalorder %s406_s9, 3  ;;  %p571_p7 = scmp.ge.s32.totalorder %s406_s9, 1 }
  0x2c   : > { %p105_p0 = pnand %p571_p7, %p570_p9 }
  0x2d   : > { %s518_s21 = sand.u32 (!%p105_p0), 1, %s398_s7   ;;  %p572_p6 = scmp.ne.s32.totalorder (!%p105_p0), %s566_s17, 0 }
  0x2e   : > { %108 = sbr.rel (%p105_p0) target bundleno = 103 (0x67), region = 24  ;;  %s255_s22 = sshll.u32 (!%p105_p0), %s518_s21, 3 }
  0x2f   : > { %s111_s23 = scalar_lea.sflag (!%p105_p0), [#allocation3], %s518_s21  ;;  %s114_s24 = scalar_lea.vmem (!%p105_p0), [#allocation2], %s255_s22 }
  0x33   : > { %385 = dma.done.wait (%p572_p6), %s111_s23, 128  }
  0x34   : > { %387 = vsyncadd (%p572_p6), %s111_s23, 4294967168  ;;  %v133_v0 = vld [vmem:[%s114_s24] sm:$0xff]  ;;  %vm138_vm0 = vcmask 1043456   ;;  %s132_s17 = scalar_lea.vmem [#allocation5], %s255_s22  ;;  %s263_s26 = sshll.u32 %s441_s10, 7 }
  0x35   : > { %v134_v1 = vmul.f32 %v133_v0, %v133_v0  ;;  %s178_s25 = sshll.u32 %s132_s17, 4  ;;  %s176_s29 = scalar_lea.hbm %s562_s1, %s263_s26  ;;  %s179_s25 = int_to_ptr.vmem [resolvable:$true] %s178_s25 }
  0x36   : > { %s164_s30 = scalar_lea.sflag [#allocation4], %s518_s21  ;;  %s342_s2 = scalar_lea.vmem %s179_s25, 128 }
  0x37   : > { %v136_v2 = vcombine.high %v134_v1, %v134_v1  ;;  %v139_v3 = vsel %vm138_vm0, %v134_v1, 0.0  ;;  %p343_p11 = scmp.ne.s32.totalorder %s179_s25, %s342_s2  ;;  %p573_p12 = scmp.ne.s32.totalorder %s567_s18, 0 }
  0x38   : > { %v140_v4 = vrot.slane %v139_v3, 4  ;;  %s409_s3 = smov [#allocation5]  }
  0x39   : > { %v146_v5 = vsel %vm138_vm0, %v136_v2, 0.0  ;;  %p344_p13 = pnand %p343_p11, %p573_p12  ;;  %s346_s4 = sshll.u32 %s409_s3, 4  ;;  %s347_s4 = int_to_ptr.vmem [resolvable:$false] %s346_s4 }
  0x3a   : > { %v141_v6 = vadd.f32 %v140_v4, %v139_v3  ;;  %v147_v7 = vrot.slane %v146_v5, 4  ;;  %s348_s5 = scalar_lea.vmem %s347_s4, 256  ;;  %p349_p3 = scmp.lt.s32.totalorder %s179_s25, %s347_s4 }
  0x3b   : > { %p345_p1 = pneg %p344_p13  ;;  %p350_p5 = scmp.lt.s32.totalorder %s348_s5, %s342_s2 }
  0x3c   : > { %v142_v8 = vrot.slane %v141_v6, 2  ;;  %v148_v9 = vadd.f32 %v147_v7, %v146_v5 }
  0x3d   : > { %p351_p8 = por %p350_p5, %p349_p3 }
  0x3e   : > { %v143_v10 = vadd.f32 %v142_v8, %v141_v6  ;;  %v149_v11 = vrot.slane %v148_v9, 2 }
  0x3f   : > { %p352_p10 = pnand %p351_p8, %p345_p1 }
  0x40   : > { %v144_v12 = vrot.slane %v143_v10, 1  ;;  %v150_v13 = vadd.f32 %v149_v11, %v148_v9 }
  0x42   : > { %v145_v14 = vadd.f32 %v144_v12, %v143_v10  ;;  %v151_v15 = vrot.slane %v150_v13, 1 }
  0x44   : > { %v152_v16 = vadd.f32 %v151_v15, %v150_v13  ;;  %v153_v17 = vmax.f32 %v145_v14, 1e-24 }
  0x46   : > { %v154_v18 = vmax.f32 %v152_v16, 1e-24  ;;  %310 = vrsqrt.f32 %v153_v17 }
  0x48   : > { %312 = vrsqrt.f32 %v154_v18 }
  0x53   : > { %v311_v19 = vpop.eup %310 }
  0x55   : > { %v313_v20 = vpop.eup %312 }
  0x56   : > { %v159_v21 = vcombine.low %v311_v19, %v313_v20 }
  0x58   : > { %v161_v22 = vmul.f32 %v159_v21, %v133_v0 }
  0x5a   : > { %162 = vst [vmem:[%s132_s17] sm:$0xff] %v161_v22 }
  0x5b   : > { %355 = shalt.err (!%p352_p10)
}
  0x5c   : > { %s356_s10 = scalar_lea.hbm %s176_s29, 128  ;;  %s360_s14 = scalar_lea.hbm %s562_s1, 256 }
  0x5d   : > { %p357_p2 = scmp.ne.s32.totalorder %s176_s29, %s356_s10  ;;  %p361_p7 = scmp.lt.s32.totalorder %s176_s29, %s562_s1 }
  0x5e   : > { %p362_p0 = scmp.lt.s32.totalorder %s360_s14, %s356_s10 }
  0x5f   : > { %p358_p4 = pnand %p357_p2, %p573_p12 }
  0x60   : > { %p363_p6 = por %p362_p0, %p361_p7 }
  0x61   : > { %p359_p9 = pneg %p358_p4 }
  0x63   : > { %p364_p11 = pnand %p363_p6, %p359_p9 }
  0x65   : > { %367 = shalt.err (!%p364_p11)
}
  0x66   : > { %266 = dma.vmem_to_hbm [thread:$0]  (%p573_p12), %s179_s25, 128, %s176_s29, %s164_s30  }
  0x67 PF: > { %s190_s21 = sand.u32 1, %s394_s6   ;;  %p574_p13 = scmp.ne.s32.totalorder %s568_s19, 0 }
  0x68   : > { %p575_p1 = scmp.ge.s32.totalorder %s406_s9, 2  ;;  %s191_s22 = scalar_lea.sflag [#allocation4], %s190_s21 }
  0x6a   : > { %p273_p3 = pnand %p575_p1, %p574_p13 }
  0x6c   : > { %p274_p5 = pneg %p273_p3 }
  0x6e   : > { %389 = dma.done.wait (%p274_p5), %s191_s22, 128  }
  0x6f   : > { %391 = vsyncadd (%p274_p5), %s191_s22, 4294967168  ;;  %p14_p8 = scmp.ge.s32.totalorder %s445_s12, 4   ;;  %s576_s6 = smov %s398_s7 }
  0x70   : > { %s577_s7 = smov %s402_s8  ;;  %s578_s8 = smov %s457_s15 }
  0x71   : > { %s579_s9 = smov %s445_s12  ;;  %16 = sbr.rel (!%p14_p8) target bundleno = 5 (0x5), region = 69 }
  0x76   :  { %196 = vsyncpa [#allocation3], 1 }
  0x77   :  { %198 = vsyncpa [#allocation3 + $0x1], 1 }
  0x78   :  { %199 = vsyncpa [#allocation4], 1 }
  0x79   :  { %201 = vsyncpa [#allocation4 + $0x1], 1 }

</bundles_post_ra>
